<compile_context>
chip_gen: v6e
topology: v6e:2x2x1
jax: 0.10.0
libtpu: 0.0.40
codegen_flags: <defaults>
</compile_context>

<pallas_src>
import math
from functools import partial

import jax
import jax.numpy as jnp
from jax.experimental import pallas as pl
from jax.experimental.pallas import tpu as pltpu


def _round_up(v, m):
    return (v + m - 1) // m * m


def _vmem_limit_bytes():
    # Generation-aware scoped-VMEM budget: ~3/4 of physical, capped at 96 MiB
    # (=> ~96 MiB on v5e/v6e's 128 MiB, ~48 MiB on v7x's 64 MiB per TC).
    try:
        cap = pltpu.get_tpu_info().vmem_capacity_bytes
        return int(min(cap * 3 // 4, 96 * 1024 * 1024))
    except Exception:
        return 48 * 1024 * 1024


# ---------------------------------------------------------------------------
# Pass 1: h = X @ W1 (bf16 MXU, f32 scratch accumulation) + per-tile batch stats
# ---------------------------------------------------------------------------
def _linear_stats_kernel(x_ref, w1_ref, sums_ref, h_ref, acc_ref):
    ki = pl.program_id(1)
    nk = pl.num_programs(1)

    partial_h = jnp.dot(x_ref[...], w1_ref[...],
                        preferred_element_type=jnp.float32)

    @pl.when(ki == 0)
    def _():
        acc_ref[...] = partial_h

    @pl.when(ki > 0)
    def _():
        acc_ref[...] += partial_h

    # K-reduction done for this batch tile: emit bf16 h and the f32 partial stats
    # (zero-padded rows contribute nothing to either sum).
    @pl.when(ki == nk - 1)
    def _():
        h = acc_ref[...]
        h_ref[...] = h.astype(h_ref.dtype)
        sum_h = jnp.sum(h, axis=0, keepdims=True)
        sum_h2 = jnp.sum(h * h, axis=0, keepdims=True)
        sums_ref[...] = jnp.concatenate([sum_h, sum_h2], axis=0)[None, :, :]


# ---------------------------------------------------------------------------
# Pass 2: folded BatchNorm -> LeakyReLU -> decoder Linear (bf16 MXU, f32 acc)
# ---------------------------------------------------------------------------
def _bn_act_decoder_kernel(h_ref, scale_ref, shift_ref, w2_ref, b2_ref, o_ref):
    h = h_ref[...].astype(jnp.float32)
    h_bn = h * scale_ref[...] + shift_ref[...]            # f32 VPU math
    a = jnp.where(h_bn > 0, h_bn, 0.01 * h_bn)            # LeakyReLU (slope 0.01)
    out = jnp.dot(a.astype(jnp.bfloat16), w2_ref[...],
                  preferred_element_type=jnp.float32)
    o_ref[...] = (out + b2_ref[...]).astype(o_ref.dtype)


def decoder_relu_forward(x, w1, gamma, beta, w2, b2, *, eps=1e-5,
                         tile_b=512, tile_k=512, tile_n=512,
                         w1_resident_bytes=16 * 1024 * 1024):
    """Forward pass of DecoderReLU (train-mode BatchNorm semantics).

    The Linear bias b1 is intentionally omitted: BatchNorm's batch-mean
    subtraction cancels it exactly, so it has no effect on the output.
    """
    B, Din = x.shape
    Dout = w1.shape[1]
    Ddec = w2.shape[1]
    f32 = jnp.float32
    bf16 = jnp.bfloat16

    dout_pad = _round_up(Dout, 128)

    # --- batch tiling (sublane multiples of 8) -------------------------------
    tile_b = min(tile_b, _round_up(B, 8))
    b_pad = _round_up(B, tile_b)
    nb = b_pad // tile_b

    # --- K (Din) tiling; keep W1 fully resident (nk == 1) when it fits -------
    din_pad = _round_up(Din, 128)
    if din_pad * dout_pad * 2 <= w1_resident_bytes:
        tile_k = din_pad                       # constant block index -> fetched once
    else:
        tile_k = min(tile_k, din_pad)
    din_pad = _round_up(din_pad, tile_k)
    nk = din_pad // tile_k

    # --- decoder-output (N) tiling so W2 never needs to fit VMEM whole -------
    ddec_pad = _round_up(Ddec, 128)
    tile_n = min(tile_n, ddec_pad)
    ddec_pad = _round_up(ddec_pad, tile_n)
    nn_tiles = ddec_pad // tile_n

    # --- bf16 MXU operands padded to the tile grid; f32 where exactness matters
    xp = jnp.pad(x.astype(bf16), ((0, b_pad - B), (0, din_pad - Din)))
    w1p = jnp.pad(w1.astype(bf16), ((0, din_pad - Din), (0, dout_pad - Dout)))
    w2p = jnp.pad(w2.astype(bf16), ((0, dout_pad - Dout), (0, ddec_pad - Ddec)))
    gp = jnp.pad(gamma.astype(f32).reshape(1, -1), ((0, 0), (0, dout_pad - Dout)))
    bp = jnp.pad(beta.astype(f32).reshape(1, -1), ((0, 0), (0, dout_pad - Dout)))
    b2p = jnp.pad(b2.astype(f32).reshape(1, -1), ((0, 0), (0, ddec_pad - Ddec)))

    vmem_limit = _vmem_limit_bytes()

    # --- pass 1: h = X @ W1 plus per-batch-tile sum(h), sum(h*h) -------------
    partial_sums, h = pl.pallas_call(
        _linear_stats_kernel,
        grid=(nb, nk),
        in_specs=[
            pl.BlockSpec((tile_b, tile_k), lambda bi, ki: (bi, ki)),   # x tile (bf16)
            pl.BlockSpec((tile_k, dout_pad), lambda bi, ki: (ki, 0)),  # w1 K-tile (bf16)
        ],
        out_specs=(
            pl.BlockSpec((1, 2, dout_pad), lambda bi, ki: (bi, 0, 0)),  # per-tile stats
            pl.BlockSpec((tile_b, dout_pad), lambda bi, ki: (bi, 0)),   # h tile (bf16)
        ),
        out_shape=(
            jax.ShapeDtypeStruct((nb, 2, dout_pad), f32),
            jax.ShapeDtypeStruct((b_pad, dout_pad), bf16),
        ),
        scratch_shapes=[pltpu.VMEM((tile_b, dout_pad), f32)],           # f32 K-accumulator
        compiler_params=pltpu.CompilerParams(
            dimension_semantics=("parallel", "arbitrary"),
            vmem_limit_bytes=vmem_limit),
    )(xp, w1p)

    # --- fold train-mode BatchNorm into a single scale/shift (tiny XLA glue) --
    sums = jnp.sum(partial_sums, axis=0)                    # (2, dout_pad)
    mean = sums[0:1, :] / B                                 # divide by REAL batch size
    var = jnp.maximum(sums[1:2, :] / B - mean * mean, 0.0)  # biased variance
    scale = gp * jax.lax.rsqrt(var + eps)
    shift = bp - mean * scale

    # --- pass 2: normalize, LeakyReLU, decoder matmul (N-tiled) ---------------
    out = pl.pallas_call(
        _bn_act_decoder_kernel,
        grid=(nb, nn_tiles),
        in_specs=[
            pl.BlockSpec((tile_b, dout_pad), lambda bi, j: (bi, 0)),    # h tile (bf16)
            pl.BlockSpec((1, dout_pad), lambda bi, j: (0, 0)),          # scale
            pl.BlockSpec((1, dout_pad), lambda bi, j: (0, 0)),          # shift
            pl.BlockSpec((dout_pad, tile_n), lambda bi, j: (0, j)),     # w2 N-tile
            pl.BlockSpec((1, tile_n), lambda bi, j: (0, j)),            # b2 N-tile
        ],
        out_specs=pl.BlockSpec((tile_b, tile_n), lambda bi, j: (bi, j)),
        out_shape=jax.ShapeDtypeStruct((b_pad, ddec_pad), x.dtype),
        compiler_params=pltpu.CompilerParams(
            dimension_semantics=("parallel", "parallel"),
            vmem_limit_bytes=vmem_limit),
    )(h, scale, shift, w2p, b2p)

    return out[:B, :Ddec]


def init_params(key, layer_in, layer_out, decoder_out):
    """Deterministic init mirroring the PyTorch module's __init__ semantics."""
    k1, k2, k3, k4 = jax.random.split(key, 4)

    # nn.init.kaiming_uniform_(weight, a=0.01, nonlinearity='leaky_relu'); fan_in=layer_in
    a = 0.01
    gain = math.sqrt(2.0 / (1.0 + a * a))
    bound1 = gain * math.sqrt(3.0 / layer_in)
    w1 = jax.random.uniform(k1, (layer_in, layer_out), jnp.float32,
                            minval=-bound1, maxval=bound1)
    # nn.Linear default bias init; kept only for the reference check — the kernel
    # provably does not need it under train-mode BatchNorm.
    bb1 = 1.0 / math.sqrt(layer_in)
    b1 = jax.random.uniform(k2, (layer_out,), jnp.float32, minval=-bb1, maxval=bb1)

    gamma = jnp.ones((layer_out,), jnp.float32)    # BatchNorm1d affine defaults
    beta = jnp.zeros((layer_out,), jnp.float32)

    # decoder = Linear(layer_out, decoder_out), PyTorch default init.
    # TODO(synk): swap in the real decoder sub-module if its structure is known.
    bw2 = 1.0 / math.sqrt(layer_out)
    w2 = jax.random.uniform(k3, (layer_out, decoder_out), jnp.float32,
                            minval=-bw2, maxval=bw2)
    b2 = jax.random.uniform(k4, (decoder_out,), jnp.float32, minval=-bw2, maxval=bw2)
    return w1, b1, gamma, beta, w2, b2


if __name__ == "__main__":
    key = jax.random.PRNGKey(0)
    kx, kp = jax.random.split(key)

    # Small but non-trivial shapes: batch padding (20 -> 24 rows), Din=200 (K padding),
    # Dout=64 -> 128 lanes, decoder_out=200 -> 256 lanes (exercises N tiling in cfg B).
    B, layer_in, layer_out, decoder_out = 20, 200, 64, 200
    x = jax.random.normal(kx, (B, layer_in), jnp.float32)
    w1, b1, gamma, beta, w2, b2 = init_params(kp, layer_in, layer_out, decoder_out)

    # Pure-JAX f32 reference with exact PyTorch train-mode semantics (including the
    # b1 add that the kernel elides — it cancels through the batch-mean subtraction).
    h = x @ w1 + b1
    mean = h.mean(axis=0, keepdims=True)
    var = ((h - mean) ** 2).mean(axis=0, keepdims=True)        # biased variance
    hb = (h - mean) / jnp.sqrt(var + 1e-5) * gamma + beta
    act = jnp.where(hb > 0, hb, 0.01 * hb)
    ref = act @ w2 + b2

    # Config A: defaults — W1 resident (nk=1), one batch tile, one N tile.
    out_a = jax.block_until_ready(
        jax.jit(decoder_relu_forward)(x, w1, gamma, beta, w2, b2))

    # Config B: forced multi-tile path — 3 batch tiles, 2 K tiles, 2 N tiles.
    fwd_b = jax.jit(partial(decoder_relu_forward, tile_b=8, tile_k=128, tile_n=128,
                            w1_resident_bytes=0))
    out_b = jax.block_until_ready(fwd_b(x, w1, gamma, beta, w2, b2))

    for name, out in (("A", out_a), ("B", out_b)):
        assert out.shape == ref.shape, (name, out.shape, ref.shape)
        err = float(jnp.max(jnp.abs(out - ref)))
        # tolerance accounts for bf16 MXU operands and the bf16 h round-trip
        assert jnp.allclose(out, ref, atol=5e-2, rtol=5e-2), (
            f"config {name}: mismatch vs reference, max abs err = {err:f}")
    print("KERNEL_OK")
</pallas_src>

<mosaic_0001>
module attributes {stable_mosaic.version = 11 : i64} {
  func.func @_linear_stats_kernel(%arg0: i32, %arg1: i32, %arg2: memref<24x256xbf16, #tpu.memory_space<vmem>>, %arg3: memref<256x128xbf16, #tpu.memory_space<vmem>>, %arg4: memref<1x2x128xf32, #tpu.memory_space<vmem>>, %arg5: memref<24x128xbf16, #tpu.memory_space<vmem>>, %arg6: memref<24x128xf32, #tpu.memory_space<vmem>>) attributes {dimension_semantics = [#tpu.dimension_semantics<parallel>, #tpu.dimension_semantics<arbitrary>], iteration_bounds = array<i64: 1, 1>, scalar_prefetch = 0 : i64, scratch_operands = 1 : i64, tpu.core_type = #tpu.core_type<tc>, window_params = [{transform_indices = @transform_0, window_bounds = array<i64: 24, 256>}, {transform_indices = @transform_1, window_bounds = array<i64: 256, 128>}, {transform_indices = @transform_2, window_bounds = array<i64: 1, 2, 128>}, {transform_indices = @transform_3, window_bounds = array<i64: 24, 128>}]} {
    %c0 = arith.constant 0 : index
    %c0_0 = arith.constant 0 : index
    %0 = vector.load %arg2[%c0, %c0_0] : memref<24x256xbf16, #tpu.memory_space<vmem>>, vector<24x256xbf16>
    %c0_1 = arith.constant 0 : index
    %c0_2 = arith.constant 0 : index
    %1 = vector.load %arg3[%c0_1, %c0_2] : memref<256x128xbf16, #tpu.memory_space<vmem>>, vector<256x128xbf16>
    %cst = arith.constant dense<0.000000e+00> : vector<24x128xf32>
    %2 = tpu.matmul %0, %1, %cst {dimension_numbers = #tpu.dot_dimension_numbers<[1], [0], [0], [1], [0, 0, 1, 1], [], []>} : vector<24x256xbf16>, vector<256x128xbf16>, vector<24x128xf32> -> vector<24x128xf32>
    %c0_i32 = arith.constant 0 : i32
    %3 = arith.cmpi eq, %arg1, %c0_i32 : i32
    %4 = arith.extui %3 : i1 to i32
    %c0_i32_3 = arith.constant 0 : i32
    %5 = arith.cmpi ne, %4, %c0_i32_3 : i32
    scf.if %5 {
      %c0_8 = arith.constant 0 : index
      %c0_9 = arith.constant 0 : index
      %12 = vector.load %arg6[%c0_8, %c0_9] : memref<24x128xf32, #tpu.memory_space<vmem>>, vector<24x128xf32>
      tpu.vector_store %arg6[%c0_8, %c0_9], %2 {strides = array<i32>} : memref<24x128xf32, #tpu.memory_space<vmem>>, vector<24x128xf32>,
    } else {
    }
    %c0_i32_4 = arith.constant 0 : i32
    %6 = arith.cmpi sgt, %arg1, %c0_i32_4 : i32
    %7 = arith.extui %6 : i1 to i32
    %c0_i32_5 = arith.constant 0 : i32
    %8 = arith.cmpi ne, %7, %c0_i32_5 : i32
    scf.if %8 {
      %c0_8 = arith.constant 0 : index
      %c0_9 = arith.constant 0 : index
      %12 = vector.load %arg6[%c0_8, %c0_9] : memref<24x128xf32, #tpu.memory_space<vmem>>, vector<24x128xf32>
      %13 = arith.addf %12, %2 : vector<24x128xf32>
      %c0_10 = arith.constant 0 : index
      %c0_11 = arith.constant 0 : index
      %14 = vector.load %arg6[%c0_10, %c0_11] : memref<24x128xf32, #tpu.memory_space<vmem>>, vector<24x128xf32>
      tpu.vector_store %arg6[%c0_10, %c0_11], %13 {strides = array<i32>} : memref<24x128xf32, #tpu.memory_space<vmem>>, vector<24x128xf32>,
    } else {
    }
    %c0_i32_6 = arith.constant 0 : i32
    %9 = arith.cmpi eq, %arg1, %c0_i32_6 : i32
    %10 = arith.extui %9 : i1 to i32
    %c0_i32_7 = arith.constant 0 : i32
    %11 = arith.cmpi ne, %10, %c0_i32_7 : i32
    scf.if %11 {
      %c0_8 = arith.constant 0 : index
      %c0_9 = arith.constant 0 : index
      %12 = vector.load %arg6[%c0_8, %c0_9] : memref<24x128xf32, #tpu.memory_space<vmem>>, vector<24x128xf32>
      %13 = arith.truncf %12 : vector<24x128xf32> to vector<24x128xbf16>
      %c0_10 = arith.constant 0 : index
      %c0_11 = arith.constant 0 : index
      %14 = vector.load %arg5[%c0_10, %c0_11] : memref<24x128xbf16, #tpu.memory_space<vmem>>, vector<24x128xbf16>
      tpu.vector_store %arg5[%c0_10, %c0_11], %13 {strides = array<i32>} : memref<24x128xbf16, #tpu.memory_space<vmem>>, vector<24x128xbf16>,
      %cst_12 = arith.constant dense<0.000000e+00> : vector<128xf32>
      %15 = vector.multi_reduction <add>, %12, %cst_12 [0] : vector<24x128xf32> to vector<128xf32>
      %16 = vector.shape_cast %15 : vector<128xf32> to vector<1x128xf32>
      %17 = arith.mulf %12, %12 : vector<24x128xf32>
      %cst_13 = arith.constant dense<0.000000e+00> : vector<128xf32>
      %18 = vector.multi_reduction <add>, %17, %cst_13 [0] : vector<24x128xf32> to vector<128xf32>
      %19 = vector.shape_cast %18 : vector<128xf32> to vector<1x128xf32>
      %20 = tpu.concatenate %16, %19 in 0 : vector<1x128xf32>, vector<1x128xf32> -> vector<2x128xf32>
      %21 = vector.shape_cast %20 : vector<2x128xf32> to vector<1x2x128xf32>
      %c0_14 = arith.constant 0 : index
      %c0_15 = arith.constant 0 : index
      %c0_16 = arith.constant 0 : index
      %22 = vector.load %arg4[%c0_14, %c0_15, %c0_16] : memref<1x2x128xf32, #tpu.memory_space<vmem>>, vector<1x2x128xf32>
      tpu.vector_store %arg4[%c0_14, %c0_15, %c0_16], %21 {strides = array<i32>} : memref<1x2x128xf32, #tpu.memory_space<vmem>>, vector<1x2x128xf32>,
    } else {
    }
    return
  }
  func.func @transform_0(%arg0: i32, %arg1: i32) -> (i32, i32) {
    %c0_i32 = arith.constant 0 : i32
    return %arg0, %arg1 : i32, i32
  }
  func.func @transform_1(%arg0: i32, %arg1: i32) -> (i32, i32) {
    %c0_i32 = arith.constant 0 : i32
    %c0_i32_0 = arith.constant 0 : i32
    return %arg1, %c0_i32 : i32, i32
  }
  func.func @transform_2(%arg0: i32, %arg1: i32) -> (i32, i32, i32) {
    %c0_i32 = arith.constant 0 : i32
    %c0_i32_0 = arith.constant 0 : i32
    %c0_i32_1 = arith.constant 0 : i32
    return %arg0, %c0_i32, %c0_i32_0 : i32, i32, i32
  }
  func.func @transform_3(%arg0: i32, %arg1: i32) -> (i32, i32) {
    %c0_i32 = arith.constant 0 : i32
    %c0_i32_0 = arith.constant 0 : i32
    return %arg0, %c0_i32 : i32, i32
  }
}

module attributes {stable_mosaic.version = 11 : i64} {
  func.func @_bn_act_decoder_kernel(%arg0: i32, %arg1: i32, %arg2: memref<24x128xbf16, #tpu.memory_space<vmem>>, %arg3: memref<1x128xf32, #tpu.memory_space<vmem>>, %arg4: memref<1x128xf32, #tpu.memory_space<vmem>>, %arg5: memref<128x256xbf16, #tpu.memory_space<vmem>>, %arg6: memref<1x256xf32, #tpu.memory_space<vmem>>, %arg7: memref<24x256xf32, #tpu.memory_space<vmem>>) attributes {dimension_semantics = [#tpu.dimension_semantics<parallel>, #tpu.dimension_semantics<parallel>], iteration_bounds = array<i64: 1, 1>, scalar_prefetch = 0 : i64, scratch_operands = 0 : i64, tpu.core_type = #tpu.core_type<tc>, window_params = [{transform_indices = @transform_0, window_bounds = array<i64: 24, 128>}, {pipeline_mode = #tpu.pipeline_mode<synchronous>, transform_indices = @transform_1, window_bounds = array<i64: 1, 128>}, {pipeline_mode = #tpu.pipeline_mode<synchronous>, transform_indices = @transform_2, window_bounds = array<i64: 1, 128>}, {transform_indices = @transform_3, window_bounds = array<i64: 128, 256>}, {transform_indices = @transform_4, window_bounds = array<i64: 1, 256>}, {transform_indices = @transform_5, window_bounds = array<i64: 24, 256>}]} {
    %c0 = arith.constant 0 : index
    %c0_0 = arith.constant 0 : index
    %0 = vector.load %arg2[%c0, %c0_0] : memref<24x128xbf16, #tpu.memory_space<vmem>>, vector<24x128xbf16>
    %1 = arith.extf %0 : vector<24x128xbf16> to vector<24x128xf32>
    %c0_1 = arith.constant 0 : index
    %c0_2 = arith.constant 0 : index
    %2 = vector.load %arg3[%c0_1, %c0_2] : memref<1x128xf32, #tpu.memory_space<vmem>>, vector<1x128xf32>
    %3 = vector.broadcast %2 : vector<1x128xf32> to vector<24x128xf32>
    %4 = arith.mulf %1, %3 : vector<24x128xf32>
    %c0_3 = arith.constant 0 : index
    %c0_4 = arith.constant 0 : index
    %5 = vector.load %arg4[%c0_3, %c0_4] : memref<1x128xf32, #tpu.memory_space<vmem>>, vector<1x128xf32>
    %6 = vector.broadcast %5 : vector<1x128xf32> to vector<24x128xf32>
    %7 = arith.addf %4, %6 : vector<24x128xf32>
    %cst = arith.constant 0.000000e+00 : f32
    %8 = vector.broadcast %cst : f32 to vector<24x128xf32>
    %9 = arith.cmpf ogt, %7, %8 : vector<24x128xf32>
    %cst_5 = arith.constant 0.00999999977 : f32
    %10 = vector.broadcast %cst_5 : f32 to vector<24x128xf32>
    %11 = arith.mulf %10, %7 : vector<24x128xf32>
    %12 = arith.select %9, %7, %11 : vector<24x128xi1>, vector<24x128xf32>
    %13 = arith.truncf %12 : vector<24x128xf32> to vector<24x128xbf16>
    %c0_6 = arith.constant 0 : index
    %c0_7 = arith.constant 0 : index
    %14 = vector.load %arg5[%c0_6, %c0_7] : memref<128x256xbf16, #tpu.memory_space<vmem>>, vector<128x256xbf16>
    %cst_8 = arith.constant dense<0.000000e+00> : vector<24x256xf32>
    %15 = tpu.matmul %13, %14, %cst_8 {dimension_numbers = #tpu.dot_dimension_numbers<[1], [0], [0], [1], [0, 0, 1, 1], [], []>} : vector<24x128xbf16>, vector<128x256xbf16>, vector<24x256xf32> -> vector<24x256xf32>
    %c0_9 = arith.constant 0 : index
    %c0_10 = arith.constant 0 : index
    %16 = vector.load %arg6[%c0_9, %c0_10] : memref<1x256xf32, #tpu.memory_space<vmem>>, vector<1x256xf32>
    %17 = vector.broadcast %16 : vector<1x256xf32> to vector<24x256xf32>
    %18 = arith.addf %15, %17 : vector<24x256xf32>
    %c0_11 = arith.constant 0 : index
    %c0_12 = arith.constant 0 : index
    %19 = vector.load %arg7[%c0_11, %c0_12] : memref<24x256xf32, #tpu.memory_space<vmem>>, vector<24x256xf32>
    tpu.vector_store %arg7[%c0_11, %c0_12], %18 {strides = array<i32>} : memref<24x256xf32, #tpu.memory_space<vmem>>, vector<24x256xf32>,
    return
  }
  func.func @transform_0(%arg0: i32, %arg1: i32) -> (i32, i32) {
    %c0_i32 = arith.constant 0 : i32
    %c0_i32_0 = arith.constant 0 : i32
    return %arg0, %c0_i32 : i32, i32
  }
  func.func @transform_1(%arg0: i32, %arg1: i32) -> (i32, i32) {
    %c0_i32 = arith.constant 0 : i32
    %c0_i32_0 = arith.constant 0 : i32
    %c0_i32_1 = arith.constant 0 : i32
    return %c0_i32, %c0_i32_0 : i32, i32
  }
  func.func @transform_2(%arg0: i32, %arg1: i32) -> (i32, i32) {
    %c0_i32 = arith.constant 0 : i32
    %c0_i32_0 = arith.constant 0 : i32
    %c0_i32_1 = arith.constant 0 : i32
    return %c0_i32, %c0_i32_0 : i32, i32
  }
  func.func @transform_3(%arg0: i32, %arg1: i32) -> (i32, i32) {
    %c0_i32 = arith.constant 0 : i32
    %c0_i32_0 = arith.constant 0 : i32
    return %c0_i32, %arg1 : i32, i32
  }
  func.func @transform_4(%arg0: i32, %arg1: i32) -> (i32, i32) {
    %c0_i32 = arith.constant 0 : i32
    %c0_i32_0 = arith.constant 0 : i32
    return %c0_i32, %arg1 : i32, i32
  }
  func.func @transform_5(%arg0: i32, %arg1: i32) -> (i32, i32) {
    %c0_i32 = arith.constant 0 : i32
    return %arg0, %arg1 : i32, i32
  }
}

</mosaic_0001>

<bundles_post_ra>
// kernel: decoder_relu_forward.3
= control target key start
LH: loop header
LB: loop body
LE: loop exit
PB: predicated region body
PF: predicated region fallthrough
CT: control target
= control target key end

     0   :  { %v328_v2 = vmov 0   ;;  %s428_s0 = inlined_call_operand.vmem [shape: bf16[24,128], index: 0, kind: input, shape index: {}]   ;;  %s429_s1 = inlined_call_operand.vmem [shape: f32[1,128], index: 1, kind: input, shape index: {}]   ;;  %s430_s2 = inlined_call_operand.vmem [shape: f32[1,128], index: 2, kind: input, shape index: {}]   ;;  %s431_s3 = inlined_call_operand.vmem [shape: bf16[128,256], index: 3, kind: input, shape index: {}]   ;;  %s432_s4 = inlined_call_operand.vmem [shape: f32[1,256], index: 4, kind: input, shape index: {}]   ;;  %s433_s5 = inlined_call_operand.hbm [shape: f32[24,256], index: 5, kind: output, shape index: {}]  }
   0x1   :  { %v282_v0 = vld [vmem:[%s431_s3 + $0x74] ss:$8 sps:$4 sm:$0xff]   ;;  %v284_v1 = vld [vmem:[%s431_s3 + $0x70] ss:$8 sps:$4 sm:$0xff]   ;;  %199 = vmatprep.mubr.bf16.mxu0 %v328_v2  ;;  %209 = vmatprep.mubr.bf16.mxu1 %v328_v2  ;;  %v285_v3 = vld [vmem:[%s431_s3 + $0x64] ss:$8 sps:$4 sm:$0xff]  }
   0x2   :  { %167 = vmatprep.subr.bf16.mxu0 %v282_v0  ;;  %262 = vmatprep.subr.bf16.mxu1 %v282_v0  ;;  %v287_v4 = vld [vmem:[%s431_s3 + $0x60] ss:$8 sps:$4 sm:$0xff]   ;;  %v288_v5 = vld [vmem:[%s431_s3 + $0x54] ss:$8 sps:$4 sm:$0xff]   ;;  %v290_v6 = vld [vmem:[%s431_s3 + $0x50] ss:$8 sps:$4 sm:$0xff]  }
   0x3   :  { %168 = vmatpush1.bf16.msra.mxu0 %v284_v1  ;;  %270 = vmatpush1.bf16.msra.mxu1 %v284_v1  ;;  %v291_v7 = vld [vmem:[%s431_s3 + $0x44] ss:$8 sps:$4 sm:$0xff]   ;;  %v293_v9 = vld [vmem:[%s431_s3 + $0x40] ss:$8 sps:$4 sm:$0xff]   ;;  %v294_v13 = vld [vmem:[%s431_s3 + $0x34] ss:$8 sps:$4 sm:$0xff]  }
   0x4   :  { %169 = vmatprep.subr.bf16.mxu0 %v285_v3  ;;  %263 = vmatprep.subr.bf16.mxu1 %v285_v3  ;;  %v259_v8 = vld [vmem:[%s428_s0] sm:$0xff]   ;;  %v24_v12 = vld [vmem:[%s428_s0 + $0x8] sm:$0xf] }
   0x5   :  { %v260_v10 = vunpack.c.l.bf16 %v259_v8  ;;  %v261_v11 = vunpack.c.h.bf16 %v259_v8  ;;  %v240_v14 = vld [vmem:[%s429_s1] ss:$0 sm:$0xff]  ;;  %v27_v15 = vunpack.c.l.bf16 %v24_v12 }
   0x7   :  { %170 = vmatpush1.bf16.msra.mxu0 %v287_v4  ;;  %271 = vmatpush1.bf16.msra.mxu1 %v287_v4 }
   0x8   :  { %171 = vmatprep.subr.bf16.mxu0 %v288_v5  ;;  %264 = vmatprep.subr.bf16.mxu1 %v288_v5 }
   0xb   :  { %172 = vmatpush1.bf16.msra.mxu0 %v290_v6  ;;  %272 = vmatpush1.bf16.msra.mxu1 %v290_v6 }
   0xc   :  { %173 = vmatprep.subr.bf16.mxu0 %v291_v7  ;;  %265 = vmatprep.subr.bf16.mxu1 %v291_v7 }
   0xd   :  { %10 = vsyncpa [#allocation3], 0  ;;  %v296_v16 = vld [vmem:[%s431_s3 + $0x30] ss:$8 sps:$4 sm:$0xff]   ;;  %v35_v17 = vmul.f32 %v260_v10, %v240_v14  ;;  %v36_v18 = vmul.f32 %v261_v11, %v240_v14  ;;  %v37_v19 = vmul.f32 %v240_v14, %v27_v15  ;;  %v297_v20 = vld [vmem:[%s431_s3 + $0x24] ss:$8 sps:$4 sm:$0xff]   ;;  %v77_v38 = vlaneseq }
   0xe   :  { %v241_v21 = vld [vmem:[%s430_s2] ss:$0 sm:$0xff]  ;;  %v300_v26 = vld [vmem:[%s431_s3 + $0x14] ss:$8 sps:$4 sm:$0xff]   ;;  %v302_v27 = vld [vmem:[%s431_s3 + $0x10] ss:$8 sps:$4 sm:$0xff]  }
   0xf   :  { %174 = vmatpush1.bf16.msra.mxu0 %v293_v9  ;;  %273 = vmatpush1.bf16.msra.mxu1 %v293_v9  ;;  %v299_v22 = vld [vmem:[%s431_s3 + $0x20] ss:$8 sps:$4 sm:$0xff]   ;;  %v45_v23 = vadd.f32 %v241_v21, %v35_v17  ;;  %v46_v24 = vadd.f32 %v241_v21, %v36_v18  ;;  %v47_v25 = vadd.f32 %v241_v21, %v37_v19  ;;  %v303_v31 = vld [vmem:[%s431_s3 + $0x4] ss:$8 sps:$4 sm:$0xff]   ;;  %v78_v39 = vshrl.u32 %v77_v38, 7 }
  0x10   :  { %175 = vmatprep.subr.bf16.mxu0 %v294_v13  ;;  %266 = vmatprep.subr.bf16.mxu1 %v294_v13  ;;  %v305_v32 = vld [vmem:[%s431_s3] ss:$8 sps:$4 sm:$0xff]   ;;  %s329_s3 = smov [#allocation2]  }
  0x11   :  { %v51_v28 = vmul.f32 0.01, %v45_v23  ;;  %v52_v29 = vmul.f32 0.01, %v46_v24  ;;  %v53_v30 = vmul.f32 0.01, %v47_v25 }
  0x12   :  { %vm48_vm0 = vcmp.gt.f32.partialorder %v45_v23, 0.0  ;;  %vm49_vm1 = vcmp.gt.f32.partialorder %v46_v24, 0.0  ;;  %vm50_vm2 = vcmp.gt.f32.partialorder %v47_v25, 0.0  ;;  %v79_v40 = vsub.s32 0, %v78_v39  ;;  %v75_v41 = vld [vmem:[%s432_s4] sm:$0x3] }
  0x13   :  { %176 = vmatpush1.bf16.msra.mxu0 %v296_v16  ;;  %274 = vmatpush1.bf16.msra.mxu1 %v296_v16  ;;  %v54_v33 = vsel %vm48_vm0, %v45_v23, %v51_v28  ;;  %v55_v34 = vsel %vm49_vm1, %v46_v24, %v52_v29  ;;  %v56_v35 = vsel %vm50_vm2, %v47_v25, %v53_v30  ;;  %v83_v42 = vsub.s32 1, %v78_v39  ;;  %s229_s7 = sshll.u32 %s329_s3, 4  ;;  %s230_s7 = int_to_ptr.vmem [resolvable:$true] %s229_s7 }
  0x14   :  { %177 = vmatprep.subr.bf16.mxu0 %v297_v20  ;;  %267 = vmatprep.subr.bf16.mxu1 %v297_v20  ;;  %v57_v36 = vpack.c.bf16 %v55_v34, %v54_v33  ;;  %v58_v37 = vpack.c.bf16 %v56_v35, %v56_v35  ;;  %v80_v43 = vrot.slane %v75_v41, %v79_v40  ;;  %s306_s4 = scalar_lea.vmem %s230_s7, 768  ;;  %p311_p1 = scmp.lt.s32.totalorder %s230_s7, %s230_s7 }
  0x15   :  { %v84_v44 = vrot.slane %v75_v41, %v83_v42  ;;  %p307_p0 = scmp.ne.s32.totalorder %s230_s7, %s306_s4  ;;  %p312_p2 = scmp.lt.s32.totalorder %s306_s4, %s306_s4 }
  0x17   :  { %178 = vmatpush1.bf16.msra.mxu0 %v299_v22  ;;  %275 = vmatpush1.bf16.msra.mxu1 %v299_v22  ;;  %p313_p3 = por %p312_p2, %p311_p1 }
  0x18   :  { %179 = vmatprep.subr.bf16.mxu0 %v300_v26  ;;  %268 = vmatprep.subr.bf16.mxu1 %v300_v26 }
  0x19   :  { %p314_p4 = pnand %p313_p3, %p307_p0 }
  0x1b   :  { %180 = vmatpush1.bf16.msra.mxu0 %v302_v27  ;;  %276 = vmatpush1.bf16.msra.mxu1 %v302_v27 }
  0x1c   :  { %181 = vmatprep.subr.bf16.mxu0 %v303_v31  ;;  %269 = vmatprep.subr.bf16.mxu1 %v303_v31 }
  0x1f   :  { %182 = vmatpush1.bf16.msra.mxu0 %v305_v32  ;;  %277 = vmatpush1.bf16.msra.mxu1 %v305_v32 }
  0x22   :  { %200 = vmatmul.mubr.bf16.vlgmr.msra.gmra.mxu0 %v57_v36  ;;  %210 = vmatmul.mubr.bf16.vlgmr.msra.gmra.mxu1 %v58_v37 }
  0xe2   :  { %v201_v45 = vpop.f32.mrf.mxu0  ;;  %v211_v46 = vpop.f32.mrf.mxu1 }
  0xe3   :  { %v202_v47 = vadd.f32 %v201_v45, %v80_v43  ;;  %v212_v48 = vadd.f32 %v211_v46, %v80_v43 }
  0xe4   :  { %v203_v49 = vpop.f32.mrf.mxu0  ;;  %v213_v50 = vpop.f32.mrf.mxu1 }
  0xe5   :  { %218 = vst [vmem:[#allocation2] sm:$0xff] %v202_v47  ;;  %222 = vst [vmem:[#allocation2 + $0x20] sm:$0xff] %v212_v48  ;;  %v204_v51 = vadd.f32 %v203_v49, %v84_v44  ;;  %v214_v52 = vadd.f32 %v213_v50, %v84_v44 }
  0xe6   :  { %v205_v53 = vpop.f32.mrf.mxu0  ;;  %v215_v54 = vpop.f32.mrf.mxu1 }
  0xe7   :  { %219 = vst [vmem:[#allocation2 + $0x8] sm:$0xff] %v204_v51  ;;  %223 = vst [vmem:[#allocation2 + $0x28] sm:$0xff] %v214_v52  ;;  %v206_v55 = vadd.f32 %v205_v53, %v80_v43 }
  0xe8   :  { %v207_v56 = vpop.f32.mrf.mxu0  ;;  %v216_v57 = vpop.f32.mrf.mxu1 }
  0xe9   :  { %220 = vst [vmem:[#allocation2 + $0x10] sm:$0xff] %v206_v55  ;;  %v208_v58 = vadd.f32 %v207_v56, %v84_v44 }
  0xeb   :  { %221 = vst [vmem:[#allocation2 + $0x18] sm:$0xff] %v208_v58 }
  0xec   :  { %317 = shalt.err (!%p314_p4)
}
  0xed   :  { %s330_s8 = smov 256   ;;  %s331_s9 = smov 16  }
  0xee   :  { %235 = dma.vmem_to_hbm [thread:$0]  %s230_s7, 768, %s433_s5, [#allocation3], %s330_s8, %s330_s8, %s331_s9  }
  0xef   :  { %326 = dma.done.wait [#allocation3], 768  }
  0xf0   :  { %327 = vsyncadd [#allocation3], 4294966528 }
  0xf1   :  { %239 = vsyncpa [#allocation3], 1 }

// kernel: decoder_relu_forward.2
= control target key start
LH: loop header
LB: loop body
LE: loop exit
PB: predicated region body
PF: predicated region fallthrough
CT: control target
= control target key end

     0   :  { %vm271_vm0 = vcmask 1040384   ;;  %s464_s1 = inlined_call_operand.vmem [shape: bf16[256,128], index: 1, kind: input, shape index: {}]   ;;  %s465_s0 = inlined_call_operand.vmem [shape: bf16[24,256], index: 0, kind: input, shape index: {}]   ;;  %s466_s3 = inlined_call_operand.vmem [shape: bf16[24,128], index: 3, kind: output, shape index: {1}]   ;;  %s467_s2 = inlined_call_operand.vmem [shape: f32[1,2,128], index: 2, kind: output, shape index: {0}]  }
   0x1   :  { %v357_v0 = vld [vmem:[%s464_s1 + $0x78] sm:$0xff]   ;;  %v359_v2 = vld [vmem:[%s464_s1 + $0x70] sm:$0xff]   ;;  %v361_v4 = vld [vmem:[%s464_s1 + $0x68] sm:$0xff]  }
   0x2   :  { %v358_v1 = vld [vmem:[%s464_s1 + $0x38] sm:$0xff]   ;;  %313 = vmatprep.subr.bf16.mxu0 %v357_v0  ;;  %341 = vmatprep.subr.bf16.mxu1 %v357_v0  ;;  %v360_v3 = vld [vmem:[%s464_s1 + $0x30] sm:$0xff]   ;;  %v362_v5 = vld [vmem:[%s464_s1 + $0x28] sm:$0xff]  }
   0x3   :  { %314 = vmatpush3.bf16.msra.mxu0 %v358_v1  ;;  %349 = vmatpush3.bf16.msra.mxu1 %v358_v1  ;;  %v363_v6 = vld [vmem:[%s464_s1 + $0x60] sm:$0xff]   ;;  %v365_v8 = vld [vmem:[%s464_s1 + $0x58] sm:$0xff]   ;;  %v367_v10 = vld [vmem:[%s464_s1 + $0x50] sm:$0xff]  }
   0x4   :  { %315 = vmatprep.subr.bf16.mxu0 %v359_v2  ;;  %342 = vmatprep.subr.bf16.mxu1 %v359_v2  ;;  %v364_v7 = vld [vmem:[%s464_s1 + $0x20] sm:$0xff]   ;;  %v366_v9 = vld [vmem:[%s464_s1 + $0x18] sm:$0xff]   ;;  %v16_v12 = vld [vmem:[%s465_s0 + $0x10] sm:$0xff] }
   0x5   :  { %v375_v11 = vld [vmem:[%s465_s0 + $0x4] ss:$8 sps:$4 sm:$0xff]   ;;  %v285_v13 = vcombine.high %v16_v12, %v16_v12  ;;  %v368_v14 = vld [vmem:[%s464_s1 + $0x10] sm:$0xff]   ;;  %v373_v19 = vld [vmem:[%s465_s0] ss:$8 sps:$4 sm:$0xff]   ;;  %v284_v20 = vcombine.low %v16_v12, %v16_v12 }
   0x6   :  { %v369_v15 = vld [vmem:[%s464_s1 + $0x48] sm:$0xff]   ;;  %194 = vmatprep.mubr.bf16.mxu0 %v375_v11  ;;  %v371_v17 = vld [vmem:[%s464_s1 + $0x40] sm:$0xff]  }
   0x7   :  { %316 = vmatpush3.bf16.msra.mxu0 %v360_v3  ;;  %350 = vmatpush3.bf16.msra.mxu1 %v360_v3  ;;  %v370_v16 = vld [vmem:[%s464_s1 + $0x8] sm:$0xff]   ;;  %v372_v18 = vld [vmem:[%s464_s1] sm:$0xff]  }
   0x8   :  { %317 = vmatprep.subr.bf16.mxu0 %v361_v4  ;;  %343 = vmatprep.subr.bf16.mxu1 %v361_v4 }
   0x9   :  { %202 = vmatprep.mubr.bf16.mxu1 %v285_v13 }
   0xb   :  { %318 = vmatpush3.bf16.msra.mxu0 %v362_v5  ;;  %351 = vmatpush3.bf16.msra.mxu1 %v362_v5 }
   0xc   :  { %319 = vmatprep.subr.bf16.mxu0 %v363_v6  ;;  %344 = vmatprep.subr.bf16.mxu1 %v363_v6 }
   0xf   :  { %320 = vmatpush3.bf16.msra.mxu0 %v364_v7  ;;  %352 = vmatpush3.bf16.msra.mxu1 %v364_v7 }
  0x10   :  { %321 = vmatprep.subr.bf16.mxu0 %v365_v8  ;;  %345 = vmatprep.subr.bf16.mxu1 %v365_v8 }
  0x13   :  { %322 = vmatpush3.bf16.msra.mxu0 %v366_v9  ;;  %353 = vmatpush3.bf16.msra.mxu1 %v366_v9 }
  0x14   :  { %323 = vmatprep.subr.bf16.mxu0 %v367_v10  ;;  %346 = vmatprep.subr.bf16.mxu1 %v367_v10 }
  0x17   :  { %324 = vmatpush3.bf16.msra.mxu0 %v368_v14  ;;  %354 = vmatpush3.bf16.msra.mxu1 %v368_v14 }
  0x18   :  { %325 = vmatprep.subr.bf16.mxu0 %v369_v15  ;;  %347 = vmatprep.subr.bf16.mxu1 %v369_v15 }
  0x1b   :  { %326 = vmatpush3.bf16.msra.mxu0 %v370_v16  ;;  %355 = vmatpush3.bf16.msra.mxu1 %v370_v16 }
  0x1c   :  { %327 = vmatprep.subr.bf16.mxu0 %v371_v17  ;;  %348 = vmatprep.subr.bf16.mxu1 %v371_v17 }
  0x1f   :  { %328 = vmatpush3.bf16.msra.mxu0 %v372_v18  ;;  %356 = vmatpush3.bf16.msra.mxu1 %v372_v18 }
  0x22   :  { %195 = vmatmul.mubr.bf16.vlgmr.msra.gmra.mxu0 %v373_v19  ;;  %203 = vmatmul.mubr.bf16.vlgmr.msra.gmra.mxu1 %v284_v20 }
  0xe2   :  { %v329_v21 = vpop.f32.mrf.mxu0  ;;  %v335_v22 = vpop.f32.mrf.mxu1 }
  0xe4   :  { %v330_v23 = vpop.f32.mrf.mxu0  ;;  %v336_v24 = vpop.f32.mrf.mxu1 }
  0xe5   :  { %v337_v25 = vadd.f32 %v336_v24, %v335_v22  ;;  %v331_v28 = vadd.f32 %v330_v23, %v329_v21 }
  0xe6   :  { %v332_v26 = vpop.f32.mrf.mxu0  ;;  %v338_v27 = vpop.f32.mrf.mxu1 }
  0xe7   :  { %v307_v29 = vpack.c.bf16 %v337_v25, %v337_v25  ;;  %v260_v33 = vmul.f32 %v331_v28, %v331_v28  ;;  %v262_v37 = vmul.f32 %v337_v25, %v337_v25 }
  0xe8   :  { %v333_v30 = vpop.f32.mrf.mxu0  ;;  %v339_v31 = vpop.f32.mrf.mxu1 }
  0xe9   :  { %251 = vst [vmem:[%s466_s3 + $0x8] sm:$0xf] %v307_v29  ;;  %v334_v32 = vadd.f32 %v333_v30, %v332_v26 }
  0xeb   :  { %v311_v34 = vpack.c.bf16 %v334_v32, %v331_v28  ;;  %v252_v35 = vadd.f32 %v334_v32, %v331_v28  ;;  %v261_v36 = vmul.f32 %v334_v32, %v334_v32 }
  0xed   :  { %312 = vst [vmem:[%s466_s3] sm:$0xff] %v311_v34   ;;  %v253_v38 = vadd.f32 %v337_v25, %v252_v35  ;;  %v263_v39 = vadd.f32 %v261_v36, %v260_v33 }
  0xef   :  { %v254_v40 = vrot.slane %v253_v38, 4  ;;  %v264_v41 = vadd.f32 %v263_v39, %v262_v37 }
  0xf1   :  { %v255_v42 = vadd.f32 %v254_v40, %v253_v38  ;;  %v265_v43 = vrot.slane %v264_v41, 4 }
  0xf3   :  { %v256_v44 = vrot.slane %v255_v42, 2  ;;  %v266_v45 = vadd.f32 %v265_v43, %v264_v41 }
  0xf5   :  { %v257_v46 = vadd.f32 %v256_v44, %v255_v42  ;;  %v267_v47 = vrot.slane %v266_v45, 2 }
  0xf7   :  { %v258_v48 = vrot.slane %v257_v46, 1  ;;  %v268_v49 = vadd.f32 %v267_v47, %v266_v45 }
  0xf9   :  { %v269_v50 = vrot.slane %v268_v49, 1  ;;  %v259_v51 = vadd.f32 %v258_v48, %v257_v46 }
  0xfb   :  { %v270_v52 = vadd.f32 %v269_v50, %v268_v49 }
  0xfd   :  { %v272_v53 = vsel %vm271_vm0, %v259_v51, %v270_v52 }
  0xfe   :  { %273 = vst [vmem:[%s467_s2] sm:$0x3] %v272_v53 }

</bundles_post_ra>
